<compile_context>
chip_gen: v5e
topology: v5e:2x2
jax: 0.10.0
libtpu: 0.0.40
codegen_flags: <defaults>
</compile_context>

<pallas_src>
import jax
import jax.numpy as jnp
from jax.experimental import pallas as pl
from jax.experimental.pallas import tpu as pltpu


# ----------------------------------------------------------------------------- kernel
def _fused_patch_embed_kernel(x_ref, w_ref, b_ref, o_ref):
    """One (tm, tn) output tile with the patchify fused in VMEM.

    x_ref: (tR, pH, DW, pW*C) bf16  -- tR rows-of-patches, straight NHWC view
    w_ref: (K, tn)            bf16  -- K = pH*pW*C, ordered (ph, pw, c)
    b_ref: (1, tn)            f32
    o_ref: (tm, tn)                 -- tm = tR * DW
    """
    tR, pH, DW, pWC = x_ref.shape
    tm = tR * DW
    # pH/DW interleave in VMEM: each ph-slice is a (tR*DW, pW*C) slab whose lane
    # dim is unchanged (cheap leading-dim merge); lane-concatenation builds the
    # (tm, K) im2col tile with K ordered (ph, pw, c), feeding one full-K MXU dot
    # (so no ragged small-K passes and no accumulator scratch).
    pieces = [x_ref[:, ph, :, :].reshape(tm, pWC) for ph in range(pH)]
    lhs = pieces[0] if pH == 1 else jnp.concatenate(pieces, axis=-1)
    acc = jnp.dot(lhs, w_ref[...], preferred_element_type=jnp.float32)
    o_ref[...] = (acc + b_ref[...]).astype(o_ref.dtype)


# ----------------------------------------------------------------------------- budgets / tiling
def _vmem_config():
    """Generation-aware (budget, vmem_limit, min_row_steps)."""
    try:
        cap = int(pltpu.get_tpu_info().vmem_capacity_bytes)
    except Exception:
        cap = 64 * 2**20
    if cap >= 96 * 2**20:                 # v5e / v6e: 128 MiB physical VMEM
        return 64 * 2**20, 96 * 2**20, 2
    # v7x: 64 MiB per TensorCore; 2 cores want >= 4 parallel row-grid steps.
    return 40 * 2**20, 56 * 2**20, 4


def _choose_tiles(R, DW, pH, pWC, N, out_bytes, budget, min_steps):
    """Pick (tR, tn, n_blocks) against the VMEM budget; minimize M-remainder waste."""
    K = pH * pWC
    bf = 2  # bf16 operand bytes

    # N tiling: full N (lane-dense stores, resident single-buffered weight) unless
    # the weight block would eat more than ~1/3 of the budget.
    tn = N
    if N % 128 == 0 and K * N * bf > budget // 3:
        tn = max(128, ((budget // 3) // (K * bf)) // 128 * 128)
        tn = min(tn, N)
    n_blocks = pl.cdiv(N, tn)
    w_bufs = 1 if n_blocks == 1 else 2    # pl.Buffered(1) when the block index is constant

    def vmem_usage(tR):
        tm = tR * DW
        u = 2 * tR * pH * DW * pWC * bf         # x block (double buffered)
        u += tm * K * bf                        # in-VMEM concatenated (tm, K) lhs
        u += w_bufs * K * tn * bf               # weight block
        u += 2 * tn * 4                         # f32 bias
        u += 2 * tm * tn * out_bytes            # out block (double buffered)
        u += tm * tn * 4                        # f32 dot result before the cast
        return u

    max_tm = 2048
    best, best_key = None, None
    for tR in range(1, R + 1):
        tm = tR * DW
        if tm > max_tm:
            break
        if tm % 8 != 0 and tR != R:             # output-store sublane alignment
            continue
        if vmem_usage(tR) > budget:
            break                               # usage is monotonic in tR
        n_row_blocks = pl.cdiv(R, tR)
        waste = n_row_blocks * tR - R           # padded rows-of-patches (masked MXU work)
        key = (n_row_blocks < min(min_steps, R),              # prefer enough parallel steps
               waste,                                          # minimize remainder waste
               0 if tm % 256 == 0 else (1 if tm % 128 == 0 else 2),
               -tm)
        if best_key is None or key < best_key:
            best, best_key = tR, key
    if best is None:
        # Pathological fallback: smallest store-aligned tR (always VMEM-tiny).
        best = next(tR for tR in range(1, R + 1) if (tR * DW) % 8 == 0 or tR == R)
    return best, tn, n_blocks


# ----------------------------------------------------------------------------- pallas_call wrapper
def fused_patch_embed_matmul(x_rows, weight, bias, *, out_dtype):
    """x_rows: [R, pH, DW, pW*C] bf16 (free NHWC view), weight: [K, N] bf16,
    bias: [1, N] f32  ->  [R*DW, N] in out_dtype, patch rows ordered (b, dh, dw)."""
    R, pH, DW, pWC = x_rows.shape
    K = pH * pWC
    K2, N = weight.shape
    assert K == K2
    out_dtype = jnp.dtype(out_dtype)
    out_bytes = out_dtype.itemsize
    M = R * DW

    budget, vmem_limit, min_steps = _vmem_config()
    tR, tn, n_blocks = _choose_tiles(R, DW, pH, pWC, N, out_bytes, budget, min_steps)
    tm = tR * DW
    grid = (pl.cdiv(R, tR), n_blocks)

    # Weight/bias block indices are constant when N is untiled: single-buffer them
    # so the freed VMEM buys a larger row tile.  (x keeps the default 2-deep
    # pipeline; deepening to pl.Buffered(3) is a sweep knob for DMA-bound shapes.)
    resident = n_blocks == 1
    if resident:
        w_spec = pl.BlockSpec((K, tn), lambda i, j: (0, j), pipeline_mode=pl.Buffered(1))
        b_spec = pl.BlockSpec((1, tn), lambda i, j: (0, j), pipeline_mode=pl.Buffered(1))
    else:
        w_spec = pl.BlockSpec((K, tn), lambda i, j: (0, j))
        b_spec = pl.BlockSpec((1, tn), lambda i, j: (0, j))

    cost = pl.CostEstimate(
        flops=2 * M * K * N,
        transcendentals=0,
        bytes_accessed=R * pH * DW * pWC * 2 + K * N * 2 + M * N * out_bytes + N * 4,
    )

    return pl.pallas_call(
        _fused_patch_embed_kernel,
        out_shape=jax.ShapeDtypeStruct((M, N), out_dtype),
        grid_spec=pltpu.PrefetchScalarGridSpec(
            num_scalar_prefetch=0,
            grid=grid,
            in_specs=[
                pl.BlockSpec((tR, pH, DW, pWC), lambda i, j: (i, 0, 0, 0)),
                w_spec,
                b_spec,
            ],
            out_specs=pl.BlockSpec((tm, tn), lambda i, j: (i, j)),
        ),
        compiler_params=pltpu.CompilerParams(
            dimension_semantics=("parallel", "parallel"),
            vmem_limit_bytes=vmem_limit,
        ),
        cost_estimate=cost,
    )(x_rows, weight, bias)


# ----------------------------------------------------------------------------- forward
def patch_embed_forward(x, conv_weight, conv_bias, patch_size,
                        pad_to_patch_size=True, data_format="NCHW", out_dtype=None):
    """PatchEmbed forward (norm_cfg=None -> no LayerNorm).

    x:           [B, C, H, W] (data_format="NCHW", PyTorch layout) or
                 [B, H, W, C] (data_format="NHWC": patchify is fully fused, no
                 XLA transpose / intermediate HBM materialization at all).
    conv_weight: [E, C, pH, pW]
    conv_bias:   [E]
    returns:     [B, DH*DW, E]
    """
    pH, pW = patch_size
    E = conv_weight.shape[0]
    cdt = jnp.bfloat16

    if data_format == "NCHW":
        B, C, H, W = x.shape
        out_dtype = jnp.dtype(out_dtype) if out_dtype is not None else x.dtype
        if pad_to_patch_size:
            pad_h, pad_w = (-H) % pH, (-W) % pW
            if pad_h or pad_w:
                # F.pad semantics: zero-pad bottom of H, right of W.
                x = jnp.pad(x, ((0, 0), (0, 0), (0, pad_h), (0, pad_w)))
        # One channels-last transpose (cast first so the written bytes are bf16).
        # TODO(synk): consuming NCHW directly inside the kernel would save this HBM
        # pass but needs a C->lane relayout per tile in VMEM; NHWC callers already
        # get the fully fused path below.
        x = jnp.transpose(x.astype(cdt), (0, 2, 3, 1))              # [B, H2, W2, C]
    elif data_format == "NHWC":
        B, H, W, C = x.shape
        out_dtype = jnp.dtype(out_dtype) if out_dtype is not None else x.dtype
        if pad_to_patch_size:
            pad_h, pad_w = (-H) % pH, (-W) % pW
            if pad_h or pad_w:
                x = jnp.pad(x, ((0, 0), (0, pad_h), (0, pad_w), (0, 0)))
        x = x.astype(cdt)                                           # [B, H2, W2, C]
    else:
        raise ValueError(f"unknown data_format: {data_format}")

    H2, W2 = x.shape[1], x.shape[2]
    DH, DW = H2 // pH, W2 // pW

    # Zero-copy NHWC view: rows-of-patches x (pH, DW, pW*C) -- the kernel's input.
    x_rows = x.reshape(B * DH, pH, DW, pW * C)

    # Conv weight -> [K, E] with K ordered (ph, pw, c) to match the kernel lane-concat.
    w = jnp.transpose(conv_weight, (2, 3, 1, 0)).reshape(pH * pW * C, E).astype(cdt)
    b = conv_bias.astype(jnp.float32).reshape(1, E)

    out = fused_patch_embed_matmul(x_rows, w, b, out_dtype=out_dtype)  # [B*DH*DW, E]
    # TODO(synk): optional LayerNorm epilogue (norm_cfg) not implemented; module
    # default norm_cfg=None matches this.
    return out.reshape(B, DH * DW, E)                                  # == flatten(2).transpose(1,2)


# ----------------------------------------------------------------------------- demo
if __name__ == "__main__":
    # Small, module-consistent shapes: in_channels=4, embed_dims=32,
    # kernel_size=stride=8, input 2x4x16x16 -> 2x2=4 patches per image.
    B, C, H, W, E = 2, 4, 16, 16, 32
    patch = (8, 8)

    key = jax.random.PRNGKey(0)
    kx, kw, kb = jax.random.split(key, 3)
    x = jax.random.normal(kx, (B, C, H, W), dtype=jnp.float32)
    fan_in = C * patch[0] * patch[1]
    conv_w = jax.random.normal(kw, (E, C, patch[0], patch[1]), dtype=jnp.float32) / jnp.sqrt(fan_in)
    conv_b = jax.random.normal(kb, (E,), dtype=jnp.float32) * 0.01

    def reference(x_in):
        # PyTorch Conv2d(stride=kernel) + flatten(2).transpose(1,2) on the same
        # bf16-rounded operands the MXU sees (f32 accumulation on both sides).
        Hh, Ww = x_in.shape[2], x_in.shape[3]
        ph_, pw_ = (-Hh) % patch[0], (-Ww) % patch[1]
        xp = jnp.pad(x_in, ((0, 0), (0, 0), (0, ph_), (0, pw_)))
        xb = xp.astype(jnp.bfloat16).astype(jnp.float32)
        wb = conv_w.astype(jnp.bfloat16).astype(jnp.float32)
        y = jax.lax.conv_general_dilated(
            xb, wb, window_strides=patch, padding="VALID",
            dimension_numbers=("NCHW", "OIHW", "NCHW"),
            precision=jax.lax.Precision.HIGHEST)
        y = y + conv_b[None, :, None, None]
        return y.reshape(y.shape[0], y.shape[1], -1).transpose(0, 2, 1)

    # NCHW path (PyTorch layout), no padding needed (16 % 8 == 0).
    out = jax.block_until_ready(patch_embed_forward(x, conv_w, conv_b, patch))
    ref = reference(x)
    assert out.shape == ref.shape == (B, (H // patch[0]) * (W // patch[1]), E)
    assert jnp.allclose(out.astype(jnp.float32), ref, atol=1e-2, rtol=1e-2), \
        float(jnp.max(jnp.abs(out.astype(jnp.float32) - ref)))

    # NCHW path with pad_to_patch_size exercised (12x12 -> zero-padded to 16x16).
    x_small = x[:, :, :12, :12]
    out2 = jax.block_until_ready(patch_embed_forward(x_small, conv_w, conv_b, patch))
    ref2 = reference(x_small)
    assert out2.shape == ref2.shape
    assert jnp.allclose(out2.astype(jnp.float32), ref2, atol=1e-2, rtol=1e-2), \
        float(jnp.max(jnp.abs(out2.astype(jnp.float32) - ref2)))

    # NHWC path: fully fused (no XLA transpose at all), must match the NCHW result.
    out3 = jax.block_until_ready(
        patch_embed_forward(jnp.transpose(x, (0, 2, 3, 1)), conv_w, conv_b, patch,
                            data_format="NHWC"))
    assert jnp.allclose(out3.astype(jnp.float32), ref, atol=1e-2, rtol=1e-2), \
        float(jnp.max(jnp.abs(out3.astype(jnp.float32) - ref)))

    print("KERNEL_OK")
</pallas_src>

<mosaic_0001>
module attributes {stable_mosaic.version = 11 : i64} {
  func.func @_fused_patch_embed_kernel(%arg0: i32, %arg1: i32, %arg2: memref<4x8x2x32xbf16, #tpu.memory_space<vmem>>, %arg3: memref<256x32xbf16, #tpu.memory_space<vmem>>, %arg4: memref<1x32xf32, #tpu.memory_space<vmem>>, %arg5: memref<8x32xf32, #tpu.memory_space<vmem>>) attributes {dimension_semantics = [#tpu.dimension_semantics<parallel>, #tpu.dimension_semantics<parallel>], iteration_bounds = array<i64: 1, 1>, scalar_prefetch = 0 : i64, scratch_operands = 0 : i64, tpu.core_type = #tpu.core_type<tc>, window_params = [{transform_indices = @transform_0, window_bounds = array<i64: 4, 8, 2, 32>}, {pipeline_mode = #tpu.pipeline_mode<synchronous>, transform_indices = @transform_1, window_bounds = array<i64: 256, 32>}, {pipeline_mode = #tpu.pipeline_mode<synchronous>, transform_indices = @transform_2, window_bounds = array<i64: 1, 32>}, {transform_indices = @transform_3, window_bounds = array<i64: 8, 32>}]} {
    %c0 = arith.constant 0 : index
    %c0_0 = arith.constant 0 : index
    %c0_1 = arith.constant 0 : index
    %c0_2 = arith.constant 0 : index
    %0 = vector.load %arg2[%c0, %c0_0, %c0_1, %c0_2] : memref<4x8x2x32xbf16, #tpu.memory_space<vmem>>, vector<4x1x2x32xbf16>
    %1 = vector.shape_cast %0 : vector<4x1x2x32xbf16> to vector<4x2x32xbf16>
    %2 = vector.shape_cast %1 : vector<4x2x32xbf16> to vector<8x32xbf16>
    %c0_3 = arith.constant 0 : index
    %c1 = arith.constant 1 : index
    %c0_4 = arith.constant 0 : index
    %c0_5 = arith.constant 0 : index
    %3 = vector.load %arg2[%c0_3, %c1, %c0_4, %c0_5] : memref<4x8x2x32xbf16, #tpu.memory_space<vmem>>, vector<4x1x2x32xbf16>
    %4 = vector.shape_cast %3 : vector<4x1x2x32xbf16> to vector<4x2x32xbf16>
    %5 = vector.shape_cast %4 : vector<4x2x32xbf16> to vector<8x32xbf16>
    %c0_6 = arith.constant 0 : index
    %c2 = arith.constant 2 : index
    %c0_7 = arith.constant 0 : index
    %c0_8 = arith.constant 0 : index
    %6 = vector.load %arg2[%c0_6, %c2, %c0_7, %c0_8] : memref<4x8x2x32xbf16, #tpu.memory_space<vmem>>, vector<4x1x2x32xbf16>
    %7 = vector.shape_cast %6 : vector<4x1x2x32xbf16> to vector<4x2x32xbf16>
    %8 = vector.shape_cast %7 : vector<4x2x32xbf16> to vector<8x32xbf16>
    %c0_9 = arith.constant 0 : index
    %c3 = arith.constant 3 : index
    %c0_10 = arith.constant 0 : index
    %c0_11 = arith.constant 0 : index
    %9 = vector.load %arg2[%c0_9, %c3, %c0_10, %c0_11] : memref<4x8x2x32xbf16, #tpu.memory_space<vmem>>, vector<4x1x2x32xbf16>
    %10 = vector.shape_cast %9 : vector<4x1x2x32xbf16> to vector<4x2x32xbf16>
    %11 = vector.shape_cast %10 : vector<4x2x32xbf16> to vector<8x32xbf16>
    %c0_12 = arith.constant 0 : index
    %c4 = arith.constant 4 : index
    %c0_13 = arith.constant 0 : index
    %c0_14 = arith.constant 0 : index
    %12 = vector.load %arg2[%c0_12, %c4, %c0_13, %c0_14] : memref<4x8x2x32xbf16, #tpu.memory_space<vmem>>, vector<4x1x2x32xbf16>
    %13 = vector.shape_cast %12 : vector<4x1x2x32xbf16> to vector<4x2x32xbf16>
    %14 = vector.shape_cast %13 : vector<4x2x32xbf16> to vector<8x32xbf16>
    %c0_15 = arith.constant 0 : index
    %c5 = arith.constant 5 : index
    %c0_16 = arith.constant 0 : index
    %c0_17 = arith.constant 0 : index
    %15 = vector.load %arg2[%c0_15, %c5, %c0_16, %c0_17] : memref<4x8x2x32xbf16, #tpu.memory_space<vmem>>, vector<4x1x2x32xbf16>
    %16 = vector.shape_cast %15 : vector<4x1x2x32xbf16> to vector<4x2x32xbf16>
    %17 = vector.shape_cast %16 : vector<4x2x32xbf16> to vector<8x32xbf16>
    %c0_18 = arith.constant 0 : index
    %c6 = arith.constant 6 : index
    %c0_19 = arith.constant 0 : index
    %c0_20 = arith.constant 0 : index
    %18 = vector.load %arg2[%c0_18, %c6, %c0_19, %c0_20] : memref<4x8x2x32xbf16, #tpu.memory_space<vmem>>, vector<4x1x2x32xbf16>
    %19 = vector.shape_cast %18 : vector<4x1x2x32xbf16> to vector<4x2x32xbf16>
    %20 = vector.shape_cast %19 : vector<4x2x32xbf16> to vector<8x32xbf16>
    %c0_21 = arith.constant 0 : index
    %c7 = arith.constant 7 : index
    %c0_22 = arith.constant 0 : index
    %c0_23 = arith.constant 0 : index
    %21 = vector.load %arg2[%c0_21, %c7, %c0_22, %c0_23] : memref<4x8x2x32xbf16, #tpu.memory_space<vmem>>, vector<4x1x2x32xbf16>
    %22 = vector.shape_cast %21 : vector<4x1x2x32xbf16> to vector<4x2x32xbf16>
    %23 = vector.shape_cast %22 : vector<4x2x32xbf16> to vector<8x32xbf16>
    %24 = tpu.concatenate %2, %5, %8, %11, %14, %17, %20, %23 in 1 : vector<8x32xbf16>, vector<8x32xbf16>, vector<8x32xbf16>, vector<8x32xbf16>, vector<8x32xbf16>, vector<8x32xbf16>, vector<8x32xbf16>, vector<8x32xbf16> -> vector<8x256xbf16>
    %c0_24 = arith.constant 0 : index
    %c0_25 = arith.constant 0 : index
    %25 = vector.load %arg3[%c0_24, %c0_25] : memref<256x32xbf16, #tpu.memory_space<vmem>>, vector<256x32xbf16>
    %cst = arith.constant dense<0.000000e+00> : vector<8x32xf32>
    %26 = tpu.matmul %24, %25, %cst {dimension_numbers = #tpu.dot_dimension_numbers<[1], [0], [0], [1], [0, 0, 1, 1], [], []>} : vector<8x256xbf16>, vector<256x32xbf16>, vector<8x32xf32> -> vector<8x32xf32>
    %c0_26 = arith.constant 0 : index
    %c0_27 = arith.constant 0 : index
    %27 = vector.load %arg4[%c0_26, %c0_27] : memref<1x32xf32, #tpu.memory_space<vmem>>, vector<1x32xf32>
    %28 = vector.broadcast %27 : vector<1x32xf32> to vector<8x32xf32>
    %29 = arith.addf %26, %28 : vector<8x32xf32>
    %c0_28 = arith.constant 0 : index
    %c0_29 = arith.constant 0 : index
    %30 = vector.load %arg5[%c0_28, %c0_29] : memref<8x32xf32, #tpu.memory_space<vmem>>, vector<8x32xf32>
    tpu.vector_store %arg5[%c0_28, %c0_29], %29 {strides = array<i32>} : memref<8x32xf32, #tpu.memory_space<vmem>>, vector<8x32xf32>,
    return
  }
  func.func @transform_0(%arg0: i32, %arg1: i32) -> (i32, i32, i32, i32) {
    %c0_i32 = arith.constant 0 : i32
    %c0_i32_0 = arith.constant 0 : i32
    %c0_i32_1 = arith.constant 0 : i32
    %c0_i32_2 = arith.constant 0 : i32
    return %arg0, %c0_i32, %c0_i32_0, %c0_i32_1 : i32, i32, i32, i32
  }
  func.func @transform_1(%arg0: i32, %arg1: i32) -> (i32, i32) {
    %c0_i32 = arith.constant 0 : i32
    %c0_i32_0 = arith.constant 0 : i32
    return %c0_i32, %arg1 : i32, i32
  }
  func.func @transform_2(%arg0: i32, %arg1: i32) -> (i32, i32) {
    %c0_i32 = arith.constant 0 : i32
    %c0_i32_0 = arith.constant 0 : i32
    return %c0_i32, %arg1 : i32, i32
  }
  func.func @transform_3(%arg0: i32, %arg1: i32) -> (i32, i32) {
    %c0_i32 = arith.constant 0 : i32
    return %arg0, %arg1 : i32, i32
  }
}

</mosaic_0001>

<bundles_post_ra>
// kernel: tpu_custom_call.1
= control target key start
LH: loop header
LB: loop body
LE: loop exit
PB: predicated region body
PF: predicated region fallthrough
CT: control target
= control target key end

     0   :  { %s688_s0 = inlined_call_operand.vmem [shape: bf16[4,8,2,32], index: 0, kind: input, shape index: {}]   ;;  %s689_s1 = inlined_call_operand.vmem [shape: bf16[256,32], index: 1, kind: input, shape index: {}]   ;;  %s690_s2 = inlined_call_operand.vmem [shape: f32[1,32], index: 2, kind: input, shape index: {}]   ;;  %s691_s3 = inlined_call_operand.hbm [shape: f32[8,32], index: 3, kind: output, shape index: {}]  }
   0x1   :  { %v15_v0 = vld [vmem:[%s688_s0] sm:$0x1]  ;;  %v16_v1 = vld [vmem:[%s688_s0 + $0x8] sm:$0x1]  ;;  %v17_v2 = vld [vmem:[%s688_s0 + $0x10] sm:$0x1] }
   0x2   :  { %v18_v3 = vld [vmem:[%s688_s0 + $0x18] sm:$0x1]  ;;  %55 = vst [vmem:[#allocation1] ss:$9 sm:$0xff] %v15_v0  ;;  %v360_v4 = vld [vmem:[%s688_s0 + $0x1] sm:$0x1] }
   0x3   :  { %58 = vst [vmem:[#allocation1 + $0x1] ss:$9 sm:$0xff] %v16_v1 }
   0x4   :  { %61 = vst [vmem:[#allocation1 + $0x2] ss:$9 sm:$0xff] %v17_v2 }
   0x5   :  { %64 = vst [vmem:[#allocation1 + $0x3] ss:$9 sm:$0xff] %v18_v3 }
   0x6   :  { %8 = vsyncpa [#allocation3], 0  ;;  %v361_v5 = vld [vmem:[%s688_s0 + $0x9] sm:$0x1]  ;;  %v362_v6 = vld [vmem:[%s688_s0 + $0x11] sm:$0x1] }
   0x7   :  { %v363_v8 = vld [vmem:[%s688_s0 + $0x19] sm:$0x1]  ;;  %v364_v9 = vld [vmem:[%s688_s0 + $0x2] sm:$0x1]  ;;  %v365_v10 = vld [vmem:[%s688_s0 + $0xa] sm:$0x1] }
   0x8   :  { %v366_v12 = vld [vmem:[%s688_s0 + $0x12] sm:$0x1]  ;;  %s499_s7 = smov 32   ;;  %v367_v13 = vld [vmem:[%s688_s0 + $0x1a] sm:$0x1]  ;;  %s500_s16 = smov 64  }
   0x9   :  { %v368_v14 = vld [vmem:[%s688_s0 + $0x3] sm:$0x1]  ;;  %v369_v15 = vld [vmem:[%s688_s0 + $0xb] sm:$0x1]  ;;  %v370_v17 = vld [vmem:[%s688_s0 + $0x13] sm:$0x1] }
   0xa   :  { %v371_v18 = vld [vmem:[%s688_s0 + $0x1b] sm:$0x1]  ;;  %v372_v19 = vld [vmem:[%s688_s0 + $0x4] sm:$0x1]  ;;  %v373_v20 = vld [vmem:[%s688_s0 + $0xc] sm:$0x1] }
   0xb   :  { %v374_v21 = vld [vmem:[%s688_s0 + $0x14] sm:$0x1]  ;;  %v375_v23 = vld [vmem:[%s688_s0 + $0x1c] sm:$0x1]  ;;  %s501_s27 = smov 96   ;;  %v457_v33 = vld [vmem:[%s689_s1 + $0x28] sm:$0xff] }
   0xc   :  { %v544_v7 = vld [vmem:[#allocation1] sm:$0xff]  ;;  %v377_v25 = vld [vmem:[%s688_s0 + $0xd] sm:$0x1]  ;;  %v378_v26 = vld [vmem:[%s688_s0 + $0x15] sm:$0x1]  ;;  %vm168_vm0 = vcmask 261120  }
   0xd   :  { %67 = vst [vmem:[#allocation1] ss:$9 sm:$0xff] %v360_v4  ;;  %v376_v24 = vld [vmem:[%s688_s0 + $0x5] sm:$0x1]  ;;  %v379_v28 = vld [vmem:[%s688_s0 + $0x1d] sm:$0x1] }
   0xe   :  { %70 = vst [vmem:[#allocation1 + $0x1] ss:$9 sm:$0xff] %v361_v5  ;;  %v459_v29 = vld [vmem:[%s689_s1 + $0x38] sm:$0xff]  ;;  %v458_v31 = vld [vmem:[%s689_s1 + $0x30] sm:$0xff]  ;;  %v380_v34 = vld [vmem:[%s688_s0 + $0x6] sm:$0x1] }
   0xf   :  { %73 = vst [vmem:[#allocation1 + $0x2] ss:$9 sm:$0xff] %v362_v6  ;;  %v467_v30 = vld [vmem:[%s689_s1 + $0x78] sm:$0xff]  ;;  %317 = vmatpush.bf16.msra.mxu0 %v459_v29  ;;  %v466_v32 = vld [vmem:[%s689_s1 + $0x70] sm:$0xff]  ;;  %v465_v35 = vld [vmem:[%s689_s1 + $0x68] sm:$0xff]  ;;  %vm171_vm1 = vcmask 523264  }
  0x10   :  { %76 = vst [vmem:[#allocation1 + $0x3] ss:$9 sm:$0xff] %v363_v8  ;;  %330 = vmatpush.bf16.msra.mxu1 %v467_v30  ;;  %v381_v36 = vld [vmem:[%s688_s0 + $0xe] sm:$0x1]  ;;  %v382_v38 = vld [vmem:[%s688_s0 + $0x16] sm:$0x1] }
  0x11   :  { %v383_v39 = vld [vmem:[%s688_s0 + $0x1e] sm:$0x1]  ;;  %v456_v40 = vld [vmem:[%s689_s1 + $0x20] sm:$0xff]  ;;  %v454_v43 = vld [vmem:[%s689_s1 + $0x10] sm:$0xff]  ;;  %vm174_vm2 = vcmask 785408   ;;  %s502_s8 = smov [#allocation2]  }
  0x12   :  { %v455_v41 = vld [vmem:[%s689_s1 + $0x18] sm:$0xff]  ;;  %v384_v42 = vld [vmem:[%s688_s0 + $0x7] sm:$0x1]  ;;  %v385_v44 = vld [vmem:[%s688_s0 + $0xf] sm:$0x1]  ;;  %s349_s9 = sshll.u32 %s502_s8, 4  ;;  %s350_s9 = int_to_ptr.vmem [resolvable:$true] %s349_s9 }
  0x13   :  { %318 = vmatpush.bf16.msra.mxu0 %v458_v31  ;;  %v386_v45 = vld [vmem:[%s688_s0 + $0x17] sm:$0x1]  ;;  %v387_v47 = vld [vmem:[%s688_s0 + $0x1f] sm:$0x1]  ;;  %v453_v48 = vld [vmem:[%s689_s1 + $0x8] sm:$0xff]  ;;  %s351_s10 = sshll.u32 %s691_s3, 4  ;;  %s352_s10 = int_to_ptr.hbm [resolvable:$true] %s351_s10 }
  0x14   :  { %331 = vmatpush.bf16.msra.mxu1 %v466_v32  ;;  %v452_v50 = vld [vmem:[%s689_s1] sm:$0xff]  ;;  %v463_v52 = vld [vmem:[%s689_s1 + $0x58] sm:$0xff]  ;;  %v462_v53 = vld [vmem:[%s689_s1 + $0x50] sm:$0xff] }
  0x15   :  { %v464_v51 = vld [vmem:[%s689_s1 + $0x60] sm:$0xff]  ;;  %v461_v54 = vld [vmem:[%s689_s1 + $0x48] sm:$0xff] }
  0x16   :  { %v460_v61 = vld [vmem:[%s689_s1 + $0x40] sm:$0xff] }
  0x17   :  { %v77_v11 = vld [vmem:[#allocation1] sm:$0xff]  ;;  %319 = vmatpush.bf16.msra.mxu0 %v457_v33 }
  0x18   :  { %79 = vrot.lane.b32.xlu0 %v77_v11, %s499_s7  ;;  %82 = vst [vmem:[#allocation1] ss:$9 sm:$0xff] %v364_v9  ;;  %332 = vmatpush.bf16.msra.mxu1 %v465_v35  ;;  %v472_v6 = vld [vmem:[%s690_s2] ss:$0 sm:$0xff] }
  0x19   :  { %85 = vst [vmem:[#allocation1 + $0x1] ss:$9 sm:$0xff] %v365_v10 }
  0x1a   :  { %88 = vst [vmem:[#allocation1 + $0x2] ss:$9 sm:$0xff] %v366_v12 }
  0x1b   :  { %91 = vst [vmem:[#allocation1 + $0x3] ss:$9 sm:$0xff] %v367_v13  ;;  %320 = vmatpush.bf16.msra.mxu0 %v456_v40 }
  0x1c   :  { %333 = vmatpush.bf16.msra.mxu1 %v464_v51 }
  0x1f   :  { %321 = vmatpush.bf16.msra.mxu0 %v455_v41 }
  0x20   :  { %334 = vmatpush.bf16.msra.mxu1 %v463_v52 }
  0x22   :  { %v92_v16 = vld [vmem:[#allocation1] sm:$0xff] }
  0x23   :  { %94 = vrot.lane.b32.xlu1 %v92_v16, %s500_s16  ;;  %97 = vst [vmem:[#allocation1] ss:$9 sm:$0xff] %v368_v14  ;;  %322 = vmatpush.bf16.msra.mxu0 %v454_v43 }
  0x24   :  { %100 = vst [vmem:[#allocation1 + $0x1] ss:$9 sm:$0xff] %v369_v15  ;;  %335 = vmatpush.bf16.msra.mxu1 %v462_v53 }
  0x25   :  { %103 = vst [vmem:[#allocation1 + $0x2] ss:$9 sm:$0xff] %v370_v17 }
  0x26   :  { %106 = vst [vmem:[#allocation1 + $0x3] ss:$9 sm:$0xff] %v371_v18 }
  0x27   :  { %323 = vmatpush.bf16.msra.mxu0 %v453_v48 }
  0x28   :  { %336 = vmatpush.bf16.msra.mxu1 %v461_v54 }
  0x2b   :  { %324 = vmatpush.bf16.msra.mxu0 %v452_v50 }
  0x2c   :  { %337 = vmatpush.bf16.msra.mxu1 %v460_v61 }
  0x2d   :  { %v107_v22 = vld [vmem:[#allocation1] sm:$0xff] }
  0x2e   :  { %112 = vst [vmem:[#allocation1] ss:$9 sm:$0xff] %v372_v19  ;;  %109 = vrot.lane.b32.xlu2 %v107_v22, %s501_s27 }
  0x2f   :  { %115 = vst [vmem:[#allocation1 + $0x1] ss:$9 sm:$0xff] %v373_v20 }
  0x30   :  { %118 = vst [vmem:[#allocation1 + $0x2] ss:$9 sm:$0xff] %v374_v21 }
  0x31   :  { %121 = vst [vmem:[#allocation1 + $0x3] ss:$9 sm:$0xff] %v375_v23 }
  0x38   :  { %v597_v27 = vld [vmem:[#allocation1] sm:$0xff] }
  0x39   :  { %124 = vst [vmem:[#allocation1] ss:$9 sm:$0xff] %v376_v24 }
  0x3a   :  { %127 = vst [vmem:[#allocation1 + $0x1] ss:$9 sm:$0xff] %v377_v25 }
  0x3b   :  { %130 = vst [vmem:[#allocation1 + $0x2] ss:$9 sm:$0xff] %v378_v26 }
  0x3c   :  { %133 = vst [vmem:[#allocation1 + $0x3] ss:$9 sm:$0xff] %v379_v28 }
  0x43   :  { %v134_v37 = vld [vmem:[#allocation1] sm:$0xff] }
  0x44   :  { %136 = vrot.lane.b32.xlu0 %v134_v37, %s499_s7  ;;  %139 = vst [vmem:[#allocation1] ss:$9 sm:$0xff] %v380_v34 }
  0x45   :  { %142 = vst [vmem:[#allocation1 + $0x1] ss:$9 sm:$0xff] %v381_v36 }
  0x46   :  { %145 = vst [vmem:[#allocation1 + $0x2] ss:$9 sm:$0xff] %v382_v38 }
  0x47   :  { %148 = vst [vmem:[#allocation1 + $0x3] ss:$9 sm:$0xff] %v383_v39 }
  0x4e   :  { %v149_v46 = vld [vmem:[#allocation1] sm:$0xff] }
  0x4f   :  { %151 = vrot.lane.b32.xlu1 %v149_v46, %s500_s16  ;;  %154 = vst [vmem:[#allocation1] ss:$9 sm:$0xff] %v384_v42 }
  0x50   :  { %157 = vst [vmem:[#allocation1 + $0x1] ss:$9 sm:$0xff] %v385_v44 }
  0x51   :  { %160 = vst [vmem:[#allocation1 + $0x2] ss:$9 sm:$0xff] %v386_v45 }
  0x52   :  { %163 = vst [vmem:[#allocation1 + $0x3] ss:$9 sm:$0xff] %v387_v47 }
  0x59   :  { %v164_v49 = vld [vmem:[#allocation1] sm:$0xff] }
  0x5a   :  { %166 = vrot.lane.b32.xlu2 %v164_v49, %s501_s27 }
  0x88   :  { %v110_v57 = vpop.permute.xlu2 %109 }
  0x8a   :  { %v80_v55 = vpop.permute.xlu0 %79 }
  0x8b   :  { %v170_v56 = vsel %vm168_vm0, %v544_v7, %v80_v55 }
  0x95   :  { %v95_v58 = vpop.permute.xlu1 %94 }
  0x96   :  { %v173_v59 = vsel %vm171_vm1, %v170_v56, %v95_v58 }
  0x97   :  { %v176_v60 = vsel %vm174_vm2, %v173_v59, %v110_v57 }
  0x98   :  { %325 = vmatmul.bf16.vlgmr.msra.gmra.mxu0 %v176_v60 }
  0xb4   :  { %v167_v0 = vpop.permute.xlu2 %166 }
  0xb6   :  { %v137_v62 = vpop.permute.xlu0 %136 }
  0xb7   :  { %v179_v63 = vsel %vm168_vm0, %v597_v27, %v137_v62 }
  0xc1   :  { %v152_v1 = vpop.permute.xlu1 %151 }
  0xc2   :  { %v181_v2 = vsel %vm171_vm1, %v179_v63, %v152_v1 }
  0xc3   :  { %v183_v3 = vsel %vm174_vm2, %v181_v2, %v167_v0 }
  0xc4   :  { %338 = vmatmul.bf16.vlgmr.msra.gmra.mxu1 %v183_v3 }
 0x115   :  { %v326_v4 = vpop.f32.mrf.mxu0 }
 0x116   :  { %v327_v7 = vadd.f32 %v472_v6, %v326_v4 }
 0x11d   :  { %v328_v5 = vpop.f32.mrf.mxu0 }
 0x141   :  { %v339_v8 = vpop.f32.mrf.mxu1 }
 0x142   :  { %v340_v9 = vadd.f32 %v339_v8, %v327_v7 }
 0x144   :  { %343 = vst.msk [vmem:[#allocation2] sm:$0xff] %vm168_vm0, %v340_v9 }
 0x145   :  { %354 = dma.vmem_to_hbm [thread:$0]  %s350_s9, 128, %s352_s10, [#allocation3]  }
 0x149   :  { %v341_v10 = vpop.f32.mrf.mxu1 }
 0x14a   :  { %497 = dma.done.wait [#allocation3], 128  }
 0x14b   :  { %498 = vsyncadd [#allocation3], 4294967168 }
 0x14c   :  { %359 = vsyncpa [#allocation3], 1 }

</bundles_post_ra>
